<compile_context>
chip_gen: v7x
topology: tpu7x:2x2x1
jax: 0.10.0
libtpu: 0.0.40
codegen_flags: <defaults>
</compile_context>

<pallas_src>
import functools

import jax
import jax.numpy as jnp
from jax.experimental import pallas as pl
from jax.experimental.pallas import tpu as pltpu


def _sdpa_kernel(*refs, inv_temperature, atten_mode, has_mask, return_attn,
                 mxu_dtype):
    q_ref, k_ref, v_ref = refs[0], refs[1], refs[2]
    idx = 3
    mask_ref = None
    if has_mask:
        mask_ref = refs[idx]
        idx += 1
    out_ref = refs[idx]
    attn_ref = refs[idx + 1] if return_attn else None

    q = q_ref[...]          # (TB, TQ, Dk)
    k = k_ref[...]          # (TB, Lk, Dk)
    v = v_ref[...]          # (TB, Lk, Dv)
    if mxu_dtype is not None:
        q = q.astype(mxu_dtype)
        k = k.astype(mxu_dtype)
        v = v.astype(mxu_dtype)

    # scores = (q @ k^T) / temperature, contracting the last dims of q and k
    # (no materialized transpose), f32 accumulation on the MXU.
    scores = jax.lax.dot_general(
        q, k,
        dimension_numbers=(((2,), (2,)), ((0,), (0,))),
        preferred_element_type=jnp.float32,
    ) * jnp.float32(inv_temperature)                       # (TB, TQ, Lk), f32

    if has_mask:
        maskf = mask_ref[...].astype(jnp.float32)
        scores = jnp.where(maskf == 0.0, jnp.float32(-1000000000.0), scores)

    if atten_mode == "softmax":
        # Numerically-stable softmax over the last axis, exact normalization
        # (the approx EUP reciprocal drifts past a 1e-3 check vs exact softmax).
        m = jnp.max(scores, axis=-1, keepdims=True)
        e = jnp.exp(scores - m)
        denom = jnp.sum(e, axis=-1, keepdims=True)
        attn = e / denom
        # TODO(synk): nn.Dropout(attn_dropout) is identity at eval time; not applied here.
    else:
        # sinkhorn normalization (5 iterations), matching the PyTorch reference.
        # Needs the full Lq extent (column sums), so the wrapper never tiles Lq.
        t = jax.nn.sigmoid(jnp.clip(scores, -50.0, 50.0))
        for _ in range(5):
            t = t / (jnp.sum(t, axis=-1, keepdims=True) + 1e-09)   # dim=3
            t = t / (jnp.sum(t, axis=-2, keepdims=True) + 1e-09)   # dim=2
        attn = t

    if has_mask:
        attn = attn * maskf   # raw mask values, exactly matching PyTorch `attn * mask`

    # output = attn @ v, attn narrowed to v's dtype for full-rate MXU feed.
    out = jax.lax.dot_general(
        attn.astype(v.dtype), v,
        dimension_numbers=(((2,), (1,)), ((0,), (0,))),
        preferred_element_type=jnp.float32,
    )                                                      # (TB, TQ, Dv)

    out_ref[...] = out.astype(out_ref.dtype)
    if return_attn:
        attn_ref[...] = attn.astype(attn_ref.dtype)


def _vmem_config():
    """Generation-aware VMEM limits: ~3/4 of physical capacity as the compiler
    limit (48 MiB on v7x, 96 MiB on v5e/v6e), and ~60% of that as the per-stage
    tile budget (double-buffering is accounted for explicitly in _choose_tiles)."""
    cap = 64 * 1024 * 1024  # conservative fallback = v7x physical VMEM
    try:
        info = pltpu.get_tpu_info()
        cap = int(getattr(info, "vmem_capacity_bytes", cap))
    except Exception:
        pass
    vmem_limit = min((cap * 3) // 4, 96 * 1024 * 1024)
    stage_budget = (vmem_limit * 3) // 5
    return vmem_limit, stage_budget


def _choose_tiles(BH, Lq, Lk, Dk, Dv, itemsize, mask_itemsize, attn_itemsize,
                  atten_mode, has_mask, return_attn, stage_budget):
    """Pick (heads-per-step TB, query tile TQ) against the per-stage VMEM budget.
    Every auto-pipelined block is counted twice (Pallas double-buffers it)."""

    def per_unit(tq):
        b = 2 * tq * Dk * itemsize          # q block
        b += 2 * Lk * Dk * itemsize         # k block
        b += 2 * Lk * Dv * itemsize         # v block
        if has_mask:
            b += 2 * tq * Lk * mask_itemsize
        b += 2 * tq * Dv * itemsize         # out block
        if return_attn:
            b += 2 * tq * Lk * attn_itemsize
        b += 3 * tq * Lk * 4                # f32 score / exp intermediates
        return b

    # Query tile: sinkhorn is never Lq-tiled; softmax prefers the largest
    # MXU-friendly divisor of Lq that fits (never degrades to a tiny tq).
    if atten_mode != "softmax":
        tq = Lq
    else:
        cands = {Lq}
        for align in (256, 128, 64, 32, 16, 8):
            cands.update(d for d in range(align, Lq, align) if Lq % d == 0)
        cands = sorted(cands, reverse=True)
        fitting = [c for c in cands if per_unit(c) <= stage_budget]
        tq = fitting[0] if fitting else cands[-1]

    unit = max(per_unit(tq), 1)
    tb = max(1, min(BH, stage_budget // unit))
    while BH % tb != 0:
        tb -= 1

    # Keep >= 2 grid steps along a "parallel" axis when possible so both
    # TensorCores get work on megacore parts (v7x).
    if BH >= 2 and (BH // tb) * (Lq // tq) < 2:
        tb = max(1, BH // 2)
        while BH % tb != 0:
            tb -= 1
    return tb, tq


def scaled_dot_product_attention(q, k, v, mask=None, *, temperature,
                                 atten_mode="softmax", return_attn=True,
                                 attn_dtype=None, mxu_dtype=None):
    """q: (B, H, Lq, Dk), k: (B, H, Lk, Dk), v: (B, H, Lk, Dv),
    mask: broadcastable to (B, H, Lq, Lk) or None.

    Returns (output, attn) like the PyTorch module; (output, None) when
    return_attn=False (skips the O(Lq*Lk) attention-matrix HBM writeback).
    mxu_dtype=jnp.bfloat16 feeds the MXU with bf16 operands (f32 accumulation)
    for ~3x matmul throughput on f32 inputs at reduced operand precision."""
    B, H, Lq, Dk = q.shape
    Lk = k.shape[2]
    Dv = v.shape[3]
    BH = B * H
    has_mask = mask is not None

    out_dtype = q.dtype
    attn_dtype = jnp.dtype(q.dtype if attn_dtype is None else attn_dtype)

    qf = q.reshape(BH, Lq, Dk)
    kf = k.reshape(BH, Lk, Dk)
    vf = v.reshape(BH, Lk, Dv)

    args = [qf, kf, vf]
    mask_itemsize = 0
    if has_mask:
        # Mask travels in q's dtype and is multiplied back with its raw values,
        # matching PyTorch semantics for arbitrary (not just 0/1) masks.
        mf = jnp.broadcast_to(mask, (B, H, Lq, Lk)).reshape(BH, Lq, Lk).astype(q.dtype)
        args.append(mf)
        mask_itemsize = mf.dtype.itemsize

    vmem_limit, stage_budget = _vmem_config()
    tb, tq = _choose_tiles(
        BH, Lq, Lk, Dk, Dv, q.dtype.itemsize, mask_itemsize,
        attn_dtype.itemsize if return_attn else 0,
        atten_mode, has_mask, return_attn, stage_budget)
    grid = (BH // tb, Lq // tq)

    kernel = functools.partial(
        _sdpa_kernel,
        inv_temperature=float(1.0 / temperature),
        atten_mode=atten_mode,
        has_mask=has_mask,
        return_attn=return_attn,
        mxu_dtype=None if mxu_dtype is None else jnp.dtype(mxu_dtype),
    )

    in_specs = [
        pl.BlockSpec((tb, tq, Dk), lambda b, qi: (b, qi, 0)),
        # TODO(synk): k/v could try pipeline_mode=pl.Buffered(1) (block index is
        # constant along qi) to trade double-buffer VMEM for larger tiles.
        pl.BlockSpec((tb, Lk, Dk), lambda b, qi: (b, 0, 0)),
        pl.BlockSpec((tb, Lk, Dv), lambda b, qi: (b, 0, 0)),
    ]
    if has_mask:
        in_specs.append(pl.BlockSpec((tb, tq, Lk), lambda b, qi: (b, qi, 0)))

    if return_attn:
        out_shape = (jax.ShapeDtypeStruct((BH, Lq, Dv), out_dtype),
                     jax.ShapeDtypeStruct((BH, Lq, Lk), attn_dtype))
        out_specs = (pl.BlockSpec((tb, tq, Dv), lambda b, qi: (b, qi, 0)),
                     pl.BlockSpec((tb, tq, Lk), lambda b, qi: (b, qi, 0)))
    else:
        out_shape = jax.ShapeDtypeStruct((BH, Lq, Dv), out_dtype)
        out_specs = pl.BlockSpec((tb, tq, Dv), lambda b, qi: (b, qi, 0))

    # Advisory cost estimate so XLA schedules surrounding HLO sensibly.
    bytes_accessed = (qf.size * qf.dtype.itemsize + kf.size * kf.dtype.itemsize
                      + vf.size * vf.dtype.itemsize
                      + (BH * Lq * Lk * mask_itemsize if has_mask else 0)
                      + BH * Lq * Dv * jnp.dtype(out_dtype).itemsize
                      + (BH * Lq * Lk * attn_dtype.itemsize if return_attn else 0))
    cost = pl.CostEstimate(flops=2 * BH * Lq * Lk * (Dk + Dv),
                           transcendentals=BH * Lq * Lk,
                           bytes_accessed=int(bytes_accessed))

    results = pl.pallas_call(
        kernel,
        out_shape=out_shape,
        grid_spec=pltpu.PrefetchScalarGridSpec(
            num_scalar_prefetch=0,
            grid=grid,
            in_specs=in_specs,
            out_specs=out_specs,
        ),
        compiler_params=pltpu.CompilerParams(
            dimension_semantics=("parallel", "parallel"),
            vmem_limit_bytes=vmem_limit,
        ),
        cost_estimate=cost,
    )(*args)

    if return_attn:
        out_flat, attn_flat = results
        return (out_flat.reshape(B, H, Lq, Dv),
                attn_flat.reshape(B, H, Lq, Lk))
    return results.reshape(B, H, Lq, Dv), None


def _reference(q, k, v, mask, temperature, atten_mode):
    """Pure-JAX reference mirroring the PyTorch forward (eval mode).  HIGHEST
    matmul precision so the comparison is not limited by XLA's default
    reduced-precision f32 matmuls on TPU."""
    hp = jax.lax.Precision.HIGHEST
    attn = jnp.einsum("bhqd,bhkd->bhqk", q / temperature, k, precision=hp)
    if mask is not None:
        attn = jnp.where(mask == 0, -1000000000.0, attn)
    if atten_mode == "softmax":
        attn = jax.nn.softmax(attn, axis=-1)
    else:
        t = jax.nn.sigmoid(jnp.clip(attn, -50.0, 50.0))
        for _ in range(5):
            t = t / (jnp.sum(t, axis=3, keepdims=True) + 1e-09)
            t = t / (jnp.sum(t, axis=2, keepdims=True) + 1e-09)
        attn = t
    if mask is not None:
        attn = attn * mask
    out = jnp.einsum("bhqk,bhkd->bhqd", attn, v, precision=hp)
    return out, attn


if __name__ == "__main__":
    key = jax.random.PRNGKey(0)
    kq, kk, kv, km = jax.random.split(key, 4)

    B, H, Lq, Lk, Dk, Dv = 2, 2, 8, 8, 16, 16
    temperature = Dk ** 0.5

    q = jax.random.normal(kq, (B, H, Lq, Dk), dtype=jnp.float32)
    k = jax.random.normal(kk, (B, H, Lk, Dk), dtype=jnp.float32)
    v = jax.random.normal(kv, (B, H, Lk, Dv), dtype=jnp.float32)
    mask = (jax.random.uniform(km, (B, H, Lq, Lk)) > 0.3).astype(jnp.float32)

    out1, attn1 = scaled_dot_product_attention(q, k, v, mask,
                                               temperature=temperature,
                                               atten_mode="softmax")
    out2, attn2 = scaled_dot_product_attention(q, k, v, None,
                                               temperature=temperature,
                                               atten_mode="softmax")
    out3, attn3 = scaled_dot_product_attention(q, k, v, mask,
                                               temperature=temperature,
                                               atten_mode="sinkhorn")
    out4, _ = scaled_dot_product_attention(q, k, v, mask,
                                           temperature=temperature,
                                           atten_mode="softmax",
                                           return_attn=False)
    out5, attn5 = scaled_dot_product_attention(q, k, v, None,
                                               temperature=temperature,
                                               atten_mode="softmax",
                                               mxu_dtype=jnp.bfloat16)
    jax.block_until_ready((out1, attn1, out2, attn2, out3, attn3, out4, out5, attn5))

    # correctness checks vs pure-JAX reference (exact normalization in-kernel)
    ro1, ra1 = _reference(q, k, v, mask, temperature, "softmax")
    ro2, ra2 = _reference(q, k, v, None, temperature, "softmax")
    ro3, ra3 = _reference(q, k, v, mask, temperature, "sinkhorn")

    tol = dict(atol=2e-3, rtol=2e-3)
    assert jnp.allclose(out1, ro1, **tol), "softmax+mask output mismatch"
    assert jnp.allclose(attn1, ra1, **tol), "softmax+mask attn mismatch"
    assert jnp.allclose(out2, ro2, **tol), "softmax output mismatch"
    assert jnp.allclose(attn2, ra2, **tol), "softmax attn mismatch"
    assert jnp.allclose(out3, ro3, **tol), "sinkhorn+mask output mismatch"
    assert jnp.allclose(attn3, ra3, **tol), "sinkhorn+mask attn mismatch"
    assert jnp.allclose(out4, out1, **tol), "return_attn=False output mismatch"
    # bf16-operand MXU path is reduced precision by design; sanity-check only.
    assert bool(jnp.all(jnp.isfinite(out5))), "bf16 MXU path produced non-finite values"

    print("KERNEL_OK")
</pallas_src>

<mosaic_0001>
module attributes {stable_mosaic.version = 11 : i64} {
  func.func @_sdpa_kernel(%arg0: i32, %arg1: i32, %arg2: memref<2x8x16xf32, #tpu.memory_space<vmem>>, %arg3: memref<2x8x16xf32, #tpu.memory_space<vmem>>, %arg4: memref<2x8x16xf32, #tpu.memory_space<vmem>>, %arg5: memref<2x8x8xf32, #tpu.memory_space<vmem>>, %arg6: memref<2x8x16xf32, #tpu.memory_space<vmem>>, %arg7: memref<2x8x8xf32, #tpu.memory_space<vmem>>) attributes {dimension_semantics = [#tpu.dimension_semantics<parallel>, #tpu.dimension_semantics<parallel>], iteration_bounds = array<i64: 2, 1>, scalar_prefetch = 0 : i64, scratch_operands = 0 : i64, tpu.core_type = #tpu.core_type<tc>, window_params = [{transform_indices = @transform_0, window_bounds = array<i64: 2, 8, 16>}, {transform_indices = @transform_1, window_bounds = array<i64: 2, 8, 16>}, {transform_indices = @transform_2, window_bounds = array<i64: 2, 8, 16>}, {transform_indices = @transform_3, window_bounds = array<i64: 2, 8, 8>}, {transform_indices = @transform_4, window_bounds = array<i64: 2, 8, 16>}, {transform_indices = @transform_5, window_bounds = array<i64: 2, 8, 8>}]} {
    %c0 = arith.constant 0 : index
    %c0_0 = arith.constant 0 : index
    %c0_1 = arith.constant 0 : index
    %0 = vector.load %arg2[%c0, %c0_0, %c0_1] : memref<2x8x16xf32, #tpu.memory_space<vmem>>, vector<2x8x16xf32>
    %c0_2 = arith.constant 0 : index
    %c0_3 = arith.constant 0 : index
    %c0_4 = arith.constant 0 : index
    %1 = vector.load %arg3[%c0_2, %c0_3, %c0_4] : memref<2x8x16xf32, #tpu.memory_space<vmem>>, vector<2x8x16xf32>
    %c0_5 = arith.constant 0 : index
    %c0_6 = arith.constant 0 : index
    %c0_7 = arith.constant 0 : index
    %2 = vector.load %arg4[%c0_5, %c0_6, %c0_7] : memref<2x8x16xf32, #tpu.memory_space<vmem>>, vector<2x8x16xf32>
    %cst = arith.constant dense<0.000000e+00> : vector<2x8x8xf32>
    %3 = tpu.matmul %0, %1, %cst {dimension_numbers = #tpu.dot_dimension_numbers<[2], [2], [1], [1], [0, 0, 0, 1, 1, 1], [0], [0]>} : vector<2x8x16xf32>, vector<2x8x16xf32>, vector<2x8x8xf32> -> vector<2x8x8xf32>
    %cst_8 = arith.constant 2.500000e-01 : f32
    %4 = vector.broadcast %cst_8 : f32 to vector<2x8x8xf32>
    %5 = arith.mulf %3, %4 : vector<2x8x8xf32>
    %c0_9 = arith.constant 0 : index
    %c0_10 = arith.constant 0 : index
    %c0_11 = arith.constant 0 : index
    %6 = vector.load %arg5[%c0_9, %c0_10, %c0_11] : memref<2x8x8xf32, #tpu.memory_space<vmem>>, vector<2x8x8xf32>
    %cst_12 = arith.constant 0.000000e+00 : f32
    %7 = vector.broadcast %cst_12 : f32 to vector<2x8x8xf32>
    %8 = arith.cmpf oeq, %6, %7 : vector<2x8x8xf32>
    %cst_13 = arith.constant -1.000000e+09 : f32
    %9 = vector.broadcast %cst_13 : f32 to vector<2x8x8xf32>
    %10 = arith.select %8, %9, %5 : vector<2x8x8xi1>, vector<2x8x8xf32>
    %cst_14 = arith.constant dense<0xFF800000> : vector<2x8xf32>
    %11 = vector.multi_reduction <maximumf>, %10, %cst_14 [2] : vector<2x8x8xf32> to vector<2x8xf32>
    %12 = vector.shape_cast %11 : vector<2x8xf32> to vector<2x8x1xf32>
    %13 = vector.broadcast %12 : vector<2x8x1xf32> to vector<2x8x8xf32>
    %14 = arith.subf %10, %13 : vector<2x8x8xf32>
    %15 = math.exp %14 : vector<2x8x8xf32>
    %cst_15 = arith.constant dense<0.000000e+00> : vector<2x8xf32>
    %16 = vector.multi_reduction <add>, %15, %cst_15 [2] : vector<2x8x8xf32> to vector<2x8xf32>
    %17 = vector.shape_cast %16 : vector<2x8xf32> to vector<2x8x1xf32>
    %18 = vector.broadcast %17 : vector<2x8x1xf32> to vector<2x8x8xf32>
    %19 = arith.divf %15, %18 : vector<2x8x8xf32>
    %20 = arith.mulf %19, %6 : vector<2x8x8xf32>
    %cst_16 = arith.constant dense<0.000000e+00> : vector<2x8x16xf32>
    %21 = tpu.matmul %20, %2, %cst_16 {dimension_numbers = #tpu.dot_dimension_numbers<[2], [1], [1], [2], [0, 0, 0, 1, 1, 2], [0], [0]>} : vector<2x8x8xf32>, vector<2x8x16xf32>, vector<2x8x16xf32> -> vector<2x8x16xf32>
    %c0_17 = arith.constant 0 : index
    %c0_18 = arith.constant 0 : index
    %c0_19 = arith.constant 0 : index
    %22 = vector.load %arg6[%c0_17, %c0_18, %c0_19] : memref<2x8x16xf32, #tpu.memory_space<vmem>>, vector<2x8x16xf32>
    tpu.vector_store %arg6[%c0_17, %c0_18, %c0_19], %21 {strides = array<i32>} : memref<2x8x16xf32, #tpu.memory_space<vmem>>, vector<2x8x16xf32>,
    %c0_20 = arith.constant 0 : index
    %c0_21 = arith.constant 0 : index
    %c0_22 = arith.constant 0 : index
    %23 = vector.load %arg7[%c0_20, %c0_21, %c0_22] : memref<2x8x8xf32, #tpu.memory_space<vmem>>, vector<2x8x8xf32>
    tpu.vector_store %arg7[%c0_20, %c0_21, %c0_22], %20 {strides = array<i32>} : memref<2x8x8xf32, #tpu.memory_space<vmem>>, vector<2x8x8xf32>,
    return
  }
  func.func @transform_0(%arg0: i32, %arg1: i32) -> (i32, i32, i32) {
    %c0_i32 = arith.constant 0 : i32
    %c0_i32_0 = arith.constant 0 : i32
    return %arg0, %arg1, %c0_i32 : i32, i32, i32
  }
  func.func @transform_1(%arg0: i32, %arg1: i32) -> (i32, i32, i32) {
    %c0_i32 = arith.constant 0 : i32
    %c0_i32_0 = arith.constant 0 : i32
    %c0_i32_1 = arith.constant 0 : i32
    return %arg0, %c0_i32, %c0_i32_0 : i32, i32, i32
  }
  func.func @transform_2(%arg0: i32, %arg1: i32) -> (i32, i32, i32) {
    %c0_i32 = arith.constant 0 : i32
    %c0_i32_0 = arith.constant 0 : i32
    %c0_i32_1 = arith.constant 0 : i32
    return %arg0, %c0_i32, %c0_i32_0 : i32, i32, i32
  }
  func.func @transform_3(%arg0: i32, %arg1: i32) -> (i32, i32, i32) {
    %c0_i32 = arith.constant 0 : i32
    %c0_i32_0 = arith.constant 0 : i32
    return %arg0, %arg1, %c0_i32 : i32, i32, i32
  }
  func.func @transform_4(%arg0: i32, %arg1: i32) -> (i32, i32, i32) {
    %c0_i32 = arith.constant 0 : i32
    %c0_i32_0 = arith.constant 0 : i32
    return %arg0, %arg1, %c0_i32 : i32, i32, i32
  }
  func.func @transform_5(%arg0: i32, %arg1: i32) -> (i32, i32, i32) {
    %c0_i32 = arith.constant 0 : i32
    %c0_i32_0 = arith.constant 0 : i32
    return %arg0, %arg1, %c0_i32 : i32, i32, i32
  }
}

</mosaic_0001>

<bundles_post_ra>
// kernel: tpu_custom_call.1
= control target key start
LH: loop header
LB: loop body
LE: loop exit
PB: predicated region body
PF: predicated region fallthrough
CT: control target
= control target key end

     0   :  { %s1807_s0 = inlined_call_operand.hbm [shape: f32[4,8,16], index: 0, kind: input, shape index: {}]   ;;  %s1808_s1 = inlined_call_operand.hbm [shape: f32[4,8,16], index: 1, kind: input, shape index: {}]   ;;  %s1809_s2 = inlined_call_operand.hbm [shape: f32[4,8,16], index: 2, kind: input, shape index: {}]   ;;  %s1810_s3 = inlined_call_operand.hbm [shape: f32[4,8,8], index: 3, kind: input, shape index: {}]   ;;  %s1811_s4 = inlined_call_operand.hbm [shape: f32[4,8,16], index: 4, kind: output, shape index: {0}]   ;;  %s1812_s5 = inlined_call_operand.hbm [shape: f32[4,8,8], index: 5, kind: output, shape index: {1}]  }
   0x1   :  { %1825 = sst [smem:[#allocation24_spill]] %s1807_s0 }
   0x2   :  { %1826 = sst [smem:[#allocation25_spill]] %s1808_s1 }
   0x3   :  { %11 = vsyncpa [#allocation3], 0 }
   0x4   :  { %13 = vsyncpa [#allocation3 + $0x1], 0 }
   0x5   :  { %14 = vsyncpa [#allocation6], 0 }
   0x6   :  { %16 = vsyncpa [#allocation6 + $0x1], 0 }
   0x7   :  { %17 = vsyncpa [#allocation9], 0 }
   0x8   :  { %19 = vsyncpa [#allocation9 + $0x1], 0 }
   0x9   :  { %20 = vsyncpa [#allocation4], 0 }
   0xa   :  { %22 = vsyncpa [#allocation4 + $0x1], 0 }
   0xb   :  { %23 = vsyncpa [#allocation12], 0 }
   0xc   :  { %25 = vsyncpa [#allocation12 + $0x1], 0  ;;  %s1418_s18 = smov 0   ;;  %s1420_s19 = smov 0  }
   0xd   :  { %s1422_s20 = smov 0   ;;  %s1424_s21 = smov 0  }
   0xe   :  { %s1426_s22 = smov 0   ;;  %s1428_s23 = smov 0  }
   0xf LB: > { %1827 = sst [smem:[#allocation18_spill]] %s1362_s20  ;;  %s1449_s24 = sadd.s32 4294967295, %s1374_s23   ;;  %s1374_s23 = sphi %s1428_s23, %s31_s23   ;;  %s1370_s22 = sphi %s1426_s22, %s1856_s22   ;;  %s1366_s21 = sphi %s1424_s21, %s1855_s21   ;;  %s1362_s20 = sphi %s1422_s20, %s1854_s20   ;;  %s1358_s19 = sphi %s1420_s19, %s1858_s19   ;;  %s1354_s18 = sphi %s1418_s18, %s1857_s18  }
  0x10   : > { %1828 = sst [smem:[#allocation19_spill]] %s1370_s22  ;;  %s966_s25 = sadd.s32 4294967294, %s1374_s23  }
  0x11   : > { %1829 = sst [smem:[#allocation20_spill]] %s1374_s23  ;;  %s43_s26 = sadd.s32 1, %s1370_s22 }
  0x12   : > { %s52_s27 = sadd.s32 1, %s1362_s20  ;;  %p45_p0 = scmp.ge.s32.totalorder %s43_s26, 2 }
  0x13   : > { %p59_p1 = scmp.ne.s32.totalorder %s1362_s20, %s1358_s19  ;;  %p60_p2 = scmp.eq.s32.totalorder %s1374_s23, 0 }
  0x14   : > { %p65_p3 = scmp.ne.s32.totalorder %s1358_s19, %s1354_s18  ;;  %s1860_s26 = smov (%p45_p0, %s43_s26), 0 }
  0x15   : > { %1830 = sst [smem:[#allocation21_spill]] %s1860_s26  ;;  %p1461_p4 = por %p60_p2, %p59_p1 }
  0x16   : > { %p66_p5 = scmp.eq.s32.totalorder %s1449_s24, 0  ;;  %s47_s29 = ssub.s32 %s1370_s22, %s1860_s26 }
  0x17   : > { %p171_p6 = scmp.eq.s32.totalorder %s1449_s24, 1  ;;  %p50_p7 = scmp.eq.s32.totalorder %s47_s29, 0 }
  0x18   : > { %p1469_p8 = por %p66_p5, %p65_p3  ;;  %p177_p10 = scmp.eq.s32.totalorder %s966_s25, 1 }
  0x19   : > { %p1473_p9 = por %p171_p6, %p59_p1  ;;  %p1068_p13 = scmp.lt.s32.totalorder %s1374_s23, 2 }
  0x1a   : > { %s1832_s30 = scalar_select %p1469_p8, 1, 0 }
  0x1b   : > { %s1833_s6 = scalar_select %p1473_p9, 1, 0 }
  0x1c   : > { %s1478_s7 = scalar_select %p50_p7, %s1362_s20, %s52_s27  }
  0x1d   : > { %p1480_p11 = por %p177_p10, %p65_p3  ;;  %s1487_s9 = sand.u32 1, %s1362_s20  }
  0x1e   : > { %1834 = sst [smem:[#allocation22_spill]] %s1478_s7  ;;  %s1490_s10 = sshll.u32 %s1487_s9, 4 }
  0x1f   : > { %s1835_s8 = scalar_select %p1480_p11, 1, 0 }
  0x20   : > { %s1493_s11 = sshll.u32 %s1370_s22, 8  ;;  %p1497_p0 = pnand %p1068_p13, %p1461_p4 }
  0x21   : > { %1836 = sst [smem:[#allocation23_spill]] %s1835_s8  ;;  %s247_s13 = sand.u32 1, %s1374_s23  }
  0x22   : > { %s1838_s1 = sld [smem:[#allocation25_spill]]  ;;  %s251_s17 = scalar_lea.vmem [#allocation5], %s1490_s10 }
  0x23   : > { %s258_s25 = sshll.u32 %s251_s17, 4  ;;  %s1513_s27 = scalar_lea.sflag [#allocation6], %s247_s13  ;;  %s1510_s25 = int_to_ptr.vmem [resolvable:$true] %s258_s25 }
  0x24   : > { %p1519_p4 = pneg %p1497_p0 }
  0x28   : > { %s1506_s16 = scalar_lea.hbm %s1838_s1, %s1493_s11  ;;  %s1137_s17 = scalar_lea.hbm %s1838_s1, 512 }
  0x29   : > { %s1132_s28 = scalar_lea.hbm %s1506_s16, 256  ;;  %p1138_p7 = scmp.lt.u32.totalorder %s1506_s16, %s1838_s1 }
  0x2a   : > { %p1133_p3 = scmp.ne.s32.totalorder %s1506_s16, %s1132_s28  ;;  %p1139_p10 = scmp.lt.u32.totalorder %s1137_s17, %s1132_s28 }
  0x2b   : > { %p1141_p12 = scmp.lt.u32.totalorder %s1132_s28, %s1506_s16 }
  0x2c   : > { %p1135_p5 = pnand %p1519_p4, %p1133_p3  ;;  %p1140_p13 = por %p1139_p10, %p1138_p7 }
  0x2e   : > { %p1136_p6 = pneg %p1135_p5  ;;  %p1142_p1 = por %p1141_p12, %p1140_p13 }
  0x30   : > { %p1143_p2 = pnand %p1142_p1, %p1136_p6 }
  0x32   : > { %1146 = shalt.err (!%p1143_p2)
}
  0x33   : > { %s1147_s13 = scalar_lea.vmem %s1510_s25, 256  ;;  %s1376_s14 = smov [#allocation5]  }
  0x34   : > { %p1148_p3 = scmp.ne.s32.totalorder %s1510_s25, %s1147_s13  ;;  %s1152_s15 = sshll.u32 %s1376_s14, 4  ;;  %s1153_s15 = int_to_ptr.vmem [resolvable:$false] %s1152_s15 }
  0x35   : > { %s1154_s22 = scalar_lea.vmem %s1153_s15, 512  ;;  %p1155_p9 = scmp.lt.s32.totalorder %s1510_s25, %s1153_s15 }
  0x36   : > { %p1150_p5 = pnand %p1148_p3, %p1519_p4  ;;  %p1156_p8 = scmp.lt.s32.totalorder %s1154_s22, %s1147_s13 }
  0x38   : > { %p1151_p11 = pneg %p1150_p5  ;;  %p1157_p7 = por %p1156_p8, %p1155_p9 }
  0x3a   : > { %p1158_p10 = pnand %p1157_p7, %p1151_p11 }
  0x3c   : > { %1161 = shalt.err (!%p1158_p10)
}
  0x3d   : > { %s1817_s26 = smov 128   ;;  %s1819_s28 = smov 8  }
  0x3e   : > { %1054 = dma.hbm_to_vmem [thread:$0]  (!%p1497_p0), %s1506_s16, 256, %s1510_s25, %s1513_s27, %s1817_s26, %s1817_s26, %s1819_s28  }
  0x3f   : > { %p1840_p8 = scmp.lt.s32.totalorder %s1374_s23, 3  ;;  %p1841_p9 = scmp.ge.s32.totalorder %s1374_s23, 1 }
  0x40   : > { %s1843_s0 = sld [smem:[#allocation24_spill]]  ;;  %s229_s22 = scalar_lea.vmem [#allocation2], %s1490_s10 }
  0x41   : > { %p1550_p11 = pnand %p1841_p9, %p1840_p8  ;;  %s237_s1 = sshll.u32 %s229_s22, 4  ;;  %s1561_s1 = int_to_ptr.vmem [resolvable:$true] %s237_s1 }
  0x42   : > { %s1567_s26 = scalar_lea.hbm %s1809_s2, %s1493_s11  ;;  %s226_s28 = scalar_lea.sflag [#allocation3], %s1487_s9 }
  0x43   : > { %s1842_s17 = scalar_select %p1550_p11, 1, 0 }
  0x46   : > { %s1558_s15 = scalar_lea.hbm %s1843_s0, %s1493_s11  ;;  %s1167_s20 = scalar_lea.hbm %s1843_s0, 512 }
  0x47   : > { %s1162_s7 = scalar_lea.hbm %s1558_s15, 256  ;;  %p1168_p6 = scmp.lt.u32.totalorder %s1558_s15, %s1843_s0 }
  0x48   : > { %p1163_p12 = scmp.ne.s32.totalorder %s1558_s15, %s1162_s7  ;;  %p1169_p13 = scmp.lt.u32.totalorder %s1167_s20, %s1162_s7 }
  0x49   : > { %p1171_p5 = scmp.lt.u32.totalorder %s1162_s7, %s1558_s15 }
  0x4a   : > { %p1165_p1 = pnand %p1163_p12, %p1519_p4  ;;  %p1170_p3 = por %p1169_p13, %p1168_p6 }
  0x4c   : > { %p1166_p2 = pneg %p1165_p1  ;;  %p1172_p7 = por %p1171_p5, %p1170_p3 }
  0x4e   : > { %p1173_p10 = pnand %p1172_p7, %p1166_p2 }
  0x50   : > { %1176 = shalt.err (!%p1173_p10)
}
  0x51   : > { %s1177_s22 = scalar_lea.vmem %s1561_s1, 256  ;;  %s1379_s16 = smov [#allocation2]  }
  0x52   : > { %p1178_p8 = scmp.ne.s32.totalorder %s1561_s1, %s1177_s22  ;;  %s1182_s25 = sshll.u32 %s1379_s16, 4  ;;  %s1183_s25 = int_to_ptr.vmem [resolvable:$false] %s1182_s25 }
  0x53   : > { %s1184_s23 = scalar_lea.vmem %s1183_s25, 512  ;;  %p1185_p1 = scmp.lt.s32.totalorder %s1561_s1, %s1183_s25 }
  0x54   : > { %p1180_p9 = pnand %p1178_p8, %p1519_p4  ;;  %p1186_p11 = scmp.lt.s32.totalorder %s1184_s23, %s1177_s22 }
  0x56   : > { %p1181_p12 = pneg %p1180_p9  ;;  %p1187_p6 = por %p1186_p11, %p1185_p1 }
  0x58   : > { %p1188_p13 = pnand %p1187_p6, %p1181_p12 }
  0x5a   : > { %1191 = shalt.err (!%p1188_p13)
}
  0x5b   : > { %s1844_s20 = smov 8   ;;  %s1845_s7 = smov 128  }
  0x5c   : > { %1051 = dma.hbm_to_vmem [thread:$0]  (!%p1497_p0), %s1558_s15, 256, %s1561_s1, %s226_s28, %s1845_s7, %s1845_s7, %s1844_s20  }
  0x5d   : > { %s272_s8 = scalar_lea.vmem [#allocation7], %s1490_s10  ;;  %s1192_s14 = scalar_lea.hbm %s1567_s26, 256 }
  0x5e   : > { %s279_s13 = sshll.u32 %s272_s8, 4  ;;  %p1193_p11 = scmp.ne.s32.totalorder %s1567_s26, %s1192_s14  ;;  %s1597_s13 = int_to_ptr.vmem [resolvable:$true] %s279_s13 }
  0x5f   : > { %s1197_s25 = scalar_lea.hbm %s1809_s2, 512  ;;  %p1198_p5 = scmp.lt.u32.totalorder %s1567_s26, %s1809_s2 }
  0x60   : > { %p1195_p2 = pnand %p1193_p11, %p1519_p4  ;;  %p1199_p7 = scmp.lt.u32.totalorder %s1197_s25, %s1192_s14 }
  0x61   : > { %p1201_p8 = scmp.lt.u32.totalorder %s1192_s14, %s1567_s26 }
  0x62   : > { %p1196_p3 = pneg %p1195_p2  ;;  %p1200_p10 = por %p1199_p7, %p1198_p5 }
  0x64   : > { %p1202_p9 = por %p1201_p8, %p1200_p10 }
  0x66   : > { %p1203_p12 = pnand %p1202_p9, %p1196_p3 }
  0x68   : > { %1206 = shalt.err (!%p1203_p12)
}
  0x69   : > { %s1207_s1 = scalar_lea.vmem %s1597_s13, 256  ;;  %s1380_s28 = smov [#allocation7]  }
  0x6a   : > { %p1208_p1 = scmp.ne.s32.totalorder %s1597_s13, %s1207_s1  ;;  %s1212_s15 = sshll.u32 %s1380_s28, 4  ;;  %s1213_s15 = int_to_ptr.vmem [resolvable:$false] %s1212_s15 }
  0x6b   : > { %s1214_s0 = scalar_lea.vmem %s1213_s15, 512  ;;  %p1215_p11 = scmp.lt.s32.totalorder %s1597_s13, %s1213_s15 }
  0x6c   : > { %p1210_p6 = pnand %p1208_p1, %p1519_p4  ;;  %p1216_p2 = scmp.lt.s32.totalorder %s1214_s0, %s1207_s1 }
  0x6e   : > { %p1211_p13 = pneg %p1210_p6  ;;  %p1217_p5 = por %p1216_p2, %p1215_p11 }
  0x70   : > { %p1218_p7 = pnand %p1217_p5, %p1211_p13 }
  0x72   : > { %1221 = shalt.err (!%p1218_p7)
}
  0x73   : > { %1057 = dma.hbm_to_vmem [thread:$0]  (!%p1497_p0), %s1567_s26, 256, %s1597_s13, %s1513_s27, %s1845_s7, %s1845_s7, %s1844_s20  }
  0x74   : > { %s1628_s22 = scalar_lea.hbm %s1810_s3, %s1493_s11  ;;  %s293_s16 = scalar_lea.vmem [#allocation8], %s1490_s10 }
  0x75   : > { %s301_s25 = sshll.u32 %s293_s16, 4  ;;  %s290_s23 = scalar_lea.sflag [#allocation9], %s1487_s9  ;;  %s1631_s25 = int_to_ptr.vmem [resolvable:$true] %s301_s25 }
  0x76   : > { %s1222_s1 = scalar_lea.hbm %s1628_s22, 256  ;;  %s1227_s13 = scalar_lea.hbm %s1810_s3, 512 }
  0x77   : > { %p1223_p3 = scmp.ne.s32.totalorder %s1628_s22, %s1222_s1  ;;  %p1228_p9 = scmp.lt.u32.totalorder %s1628_s22, %s1810_s3 }
  0x78   : > { %p1229_p12 = scmp.lt.u32.totalorder %s1227_s13, %s1222_s1  ;;  %p1231_p6 = scmp.lt.u32.totalorder %s1222_s1, %s1628_s22 }
  0x79   : > { %p1225_p10 = pnand %p1223_p3, %p1519_p4 }
  0x7a   : > { %p1230_p1 = por %p1229_p12, %p1228_p9 }
  0x7b   : > { %p1226_p8 = pneg %p1225_p10 }
  0x7c   : > { %p1232_p13 = por %p1231_p6, %p1230_p1 }
  0x7e   : > { %p1233_p11 = pnand %p1232_p13, %p1226_p8 }
  0x80   : > { %1236 = shalt.err (!%p1233_p11)
}
  0x81   : > { %s1237_s10 = scalar_lea.vmem %s1631_s25, 256  ;;  %s1381_s15 = smov [#allocation8]  }
  0x82   : > { %p1238_p2 = scmp.ne.s32.totalorder %s1631_s25, %s1237_s10  ;;  %s1242_s0 = sshll.u32 %s1381_s15, 4  ;;  %s1243_s0 = int_to_ptr.vmem [resolvable:$false] %s1242_s0 }
  0x83   : > { %s1244_s8 = scalar_lea.vmem %s1243_s0, 512  ;;  %p1245_p3 = scmp.lt.s32.totalorder %s1631_s25, %s1243_s0 }
  0x84   : > { %p1240_p5 = pnand %p1238_p2, %p1519_p4  ;;  %p1246_p10 = scmp.lt.s32.totalorder %s1244_s8, %s1237_s10 }
  0x86   : > { %p1241_p7 = pneg %p1240_p5  ;;  %p1247_p9 = por %p1246_p10, %p1245_p3 }
  0x88   : > { %p1248_p12 = pnand %p1247_p9, %p1241_p7 }
  0x8a   : > { %1251 = shalt.err (!%p1248_p12)
}
  0x8b   : > { %1060 = dma.hbm_to_vmem [thread:$0]  (!%p1497_p0), %s1628_s22, 256, %s1631_s25, %s290_s23, %s1845_s7, %s1845_s7, %s1844_s20  }
  0x8c   : > { %p1846_p4 = scmp.ne.s32.totalorder %s1842_s17, 0 }
  0x8d   : > { %s1663_s29 = sand.u32 (!%p1846_p4), 1, %s1358_s19   ;;  %p1847_p8 = scmp.ne.s32.totalorder (!%p1846_p4), %s1832_s30, 0 }
  0x8e   : > { %313 = sbr.rel (%p1846_p4) target bundleno = 923 (0x39b), region = 36  ;;  %s1666_s14 = sshll.u32 (!%p1846_p4), %s1663_s29, 4 }
  0x8f   : > { %s316_s12 = scalar_lea.sflag (!%p1846_p4), [#allocation3], %s1663_s29  ;;  %s319_s16 = scalar_lea.vmem (!%p1846_p4), [#allocation2], %s1666_s14 }
  0x95   : > { %1333 = dma.done.wait (%p1847_p8), %s316_s12, 256  }
  0x96   : > { %1335 = vsyncadd (%p1847_p8), %s316_s12, 4294967040  ;;  %s324_s9 = sand.u32 1, %s1449_s24   ;;  %s328_s20 = scalar_lea.vmem [#allocation5], %s1666_s14 }
  0x97   : > { %s325_s17 = scalar_lea.sflag [#allocation6], %s324_s9 }
  0x98   : > { %1337 = dma.done.wait (%p1847_p8), %s325_s17, 512  }
  0x99   : > { %1339 = vsyncadd (%p1847_p8), %s325_s17, 4294966784  ;;  %s337_s7 = scalar_lea.vmem [#allocation7], %s1666_s14  ;;  %s343_s22 = scalar_lea.sflag [#allocation9], %s1663_s29 }
  0x9a   : > { %s346_s25 = scalar_lea.vmem [#allocation8], %s1666_s14 }
  0x9b   : > { %1341 = dma.done.wait (%p1847_p8), %s343_s22, 256  }
  0x9c   : > { %1343 = vsyncadd (%p1847_p8), %s343_s22, 4294967040  ;;  %v1382_v0 = vmov 0.0   ;;  %vm1383_vm0 = vmmov 0   ;;  %vm405_vm1 = vcmask 130048   ;;  %v401_v1 = vld [vmem:[%s328_s20] sm:$0xff]  ;;  %v402_v2 = vld [vmem:[%s328_s20 + $0x8] sm:$0xff] }
  0x9d   : > { %1016 = vmatprep.subr.mxu0 %v1382_v0  ;;  %1018 = vmatprep.mubr.msk.f32.mxu0 %vm1383_vm0, %v1382_v0  ;;  %v399_v3 = vld [vmem:[%s319_s16] sm:$0xff]  ;;  %v400_v4 = vld [vmem:[%s319_s16 + $0x8] sm:$0xff]  ;;  %vm566_vm4 = vcmask 64512   ;;  %s392_s24 = scalar_lea.vmem [#allocation11], %s1666_s14  ;;  %s1006_s30 = sshll.u32 %s1366_s21, 8 }
  0x9e   : > { %1021 = vmatprep.subr.mxu1 %v1382_v0  ;;  %1023 = vmatprep.mubr.msk.f32.mxu1 %vm1383_vm0, %v1382_v0  ;;  %v560_v5 = vld [vmem:[%s346_s25] sm:$0xff]  ;;  %v561_v6 = vld [vmem:[%s346_s25 + $0x8] sm:$0xff]  ;;  %s778_s23 = sshll.u32 %s392_s24, 4  ;;  %s1714_s26 = scalar_lea.hbm %s1812_s5, %s1006_s30  ;;  %s1716_s23 = int_to_ptr.vmem [resolvable:$true] %s778_s23 }
  0x9f   : > { %1017 = vmatpush3.xpose.msk.msra.mxu0 %vm405_vm1, %v401_v1  ;;  %1022 = vmatpush3.xpose.msk.msra.mxu1 %vm405_vm1, %v402_v2  ;;  %vm562_vm2 = vcmp.eq.f32.partialorder %v560_v5, 0.0  ;;  %vm563_vm3 = vcmp.eq.f32.partialorder %v561_v6, 0.0  ;;  %v403_v27 = vld [vmem:[%s337_s7] sm:$0xff]  ;;  %v404_v28 = vld [vmem:[%s337_s7 + $0x8] sm:$0xff]  ;;  %s747_s13 = scalar_lea.sflag [#allocation12], %s1663_s29  ;;  %s1252_s11 = scalar_lea.vmem %s1716_s23, 256 }
  0xa0   : > { %1026 = vmatprep.subr.mxu0 %v1382_v0  ;;  %1031 = vmatprep.subr.mxu1 %v1382_v0  ;;  %p1253_p0 = scmp.ne.s32.totalorder %s1716_s23, %s1252_s11  ;;  %p1848_p1 = scmp.ne.s32.totalorder %s1833_s6, 0 }
  0xa1   : > { %s1384_s28 = smov [#allocation11]  }
  0xa2   : > { %1019 = vmatmul.mubr.msk.f32.vlgmr.msra.gmra.mrb[0].mxu0 %vm405_vm1, %v399_v3  ;;  %1024 = vmatmul.mubr.msk.f32.vlgmr.msra.gmra.mrb[0].mxu1 %vm405_vm1, %v400_v4  ;;  %p1254_p6 = pnand %p1253_p0, %p1848_p1  ;;  %s1256_s10 = sshll.u32 %s1384_s28, 4  ;;  %s1257_s10 = int_to_ptr.vmem [resolvable:$false] %s1256_s10 }
  0xa3   : > { %1028 = vmatprep.mubr.msk.f32.mxu0 %vm1383_vm0, %v1382_v0  ;;  %1033 = vmatprep.mubr.msk.f32.mxu1 %vm1383_vm0, %v1382_v0  ;;  %s1258_s15 = scalar_lea.vmem %s1257_s10, 512  ;;  %p1259_p11 = scmp.lt.s32.totalorder %s1716_s23, %s1257_s10 }
  0xa4   : > { %1027 = vmatpush3.msra.mxu0 %v403_v27  ;;  %1032 = vmatpush3.msra.mxu1 %v404_v28  ;;  %p1255_p13 = pneg %p1254_p6  ;;  %p1260_p2 = scmp.lt.s32.totalorder %s1258_s15, %s1252_s11 }
  0xa6   : > { %p1261_p5 = por %p1260_p2, %p1259_p11 }
  0xa8   : > { %p1262_p7 = pnand %p1261_p5, %p1255_p13 }
 0x175   : > { %v478_v7 = vpop.f32.mrb[0].mxu0  ;;  %v554_v8 = vpop.f32.mrb[0].mxu1 }
 0x176   : > { %v558_v9 = vmul.f32 0.25, %v478_v7  ;;  %v1020_v10 = vpop.f32.mrb[1].mxu0  ;;  %v559_v11 = vmul.f32 0.25, %v554_v8  ;;  %v1025_v12 = vpop.f32.mrb[1].mxu1 }
 0x178   : > { %v564_v13 = vsel %vm562_vm2, -1e+09, %v558_v9  ;;  %v565_v14 = vsel %vm563_vm3, -1e+09, %v559_v11 }
 0x179   : > { %v567_v15 = vsel %vm566_vm4, %v564_v13, -inf  ;;  %v570_v16 = vsel %vm566_vm4, %v565_v14, -inf }
 0x17a   : > { %568 = vmax.xlane.f32.xlu0 %v567_v15 }
 0x17e   : > { %571 = vmax.xlane.f32.xlu0 %v570_v16 }
 0x207   : > { %v569_v17 = vpop.xlane.xlu0 %568 }
 0x208   : > { %v573_v18 = vsub.f32 %v564_v13, %v569_v17 }
 0x20a   : > { %v575_v19 = vmul.f32 1.442695, %v573_v18 }
 0x20b   : > { %v572_v20 = vpop.xlane.xlu0 %571 }
 0x20c   : > { %1124 = vpow2.f32 %v575_v19  ;;  %v574_v21 = vsub.f32 %v565_v14, %v572_v20 }
 0x20e   : > { %v577_v22 = vmul.f32 1.442695, %v574_v21 }
 0x210   : > { %1126 = vpow2.f32 %v577_v22 }
 0x216   : > { %v1125_v23 = vpop.eup %1124 }
 0x217   : > { %v579_v24 = vsel %vm566_vm4, %v1125_v23, 0.0 }
 0x218   : > { %580 = vadd.xlane.f32.xlu1 %v579_v24 }
 0x21a   : > { %v1127_v25 = vpop.eup %1126 }
 0x21b   : > { %v582_v26 = vsel %vm566_vm4, %v1127_v25, 0.0 }
 0x21c   : > { %583 = vadd.xlane.f32.xlu1 %v582_v26 }
 0x2a5   : > { %v581_v29 = vpop.xlane.xlu1 %580 }
 0x2a6   : > { %1128 = vrcp.f32 %v581_v29 }
 0x2a9   : > { %v584_v30 = vpop.xlane.xlu1 %583 }
 0x2aa   : > { %1130 = vrcp.f32 %v584_v30 }
 0x2b0   : > { %v1129_v31 = vpop.eup %1128 }
 0x2b1   : > { %v586_v32 = vmul.f32 %v1129_v31, %v1125_v23 }
 0x2b3   : > { %v589_v33 = vmul.f32 %v586_v32, %v560_v5 }
 0x2b4   : > { %v1131_v34 = vpop.eup %1130 }
 0x2b5   : > { %v588_v35 = vmul.f32 %v1131_v34, %v1127_v25  ;;  %1029 = vmatmul.mubr.msk.f32.vlgmr.msra.gmra.mrb[2].mxu0 %vm566_vm4, %v589_v33  ;;  %739 = vst.msk [vmem:[%s392_s24] sm:$0xff] %vm566_vm4, %v589_v33 }
 0x2b7   : > { %v590_v36 = vmul.f32 %v588_v35, %v561_v6 }
 0x2b9   : > { %1034 = vmatmul.mubr.msk.f32.vlgmr.msra.gmra.mrb[2].mxu1 %vm566_vm4, %v590_v36  ;;  %740 = vst.msk [vmem:[%s392_s24 + $0x8] sm:$0xff] %vm566_vm4, %v590_v36 }
 0x2ba   : > { %1265 = shalt.err (!%p1262_p7)
}
 0x2bb   : > { %s1266_s0 = scalar_lea.hbm %s1714_s26, 256  ;;  %s1270_s16 = scalar_lea.hbm %s1812_s5, 512 }
 0x2bc   : > { %p1267_p3 = scmp.ne.s32.totalorder %s1714_s26, %s1266_s0  ;;  %p1271_p12 = scmp.lt.u32.totalorder %s1714_s26, %s1812_s5 }
 0x2bd   : > { %p1272_p4 = scmp.lt.u32.totalorder %s1270_s16, %s1266_s0  ;;  %p1274_p0 = scmp.lt.u32.totalorder %s1266_s0, %s1714_s26 }
 0x2be   : > { %p1268_p10 = pnand %p1267_p3, %p1848_p1 }
 0x2bf   : > { %p1273_p8 = por %p1272_p4, %p1271_p12 }
 0x2c0   : > { %p1269_p9 = pneg %p1268_p10 }
 0x2c1   : > { %p1275_p6 = por %p1274_p0, %p1273_p8 }
 0x2c3   : > { %p1276_p13 = pnand %p1275_p6, %p1269_p9 }
 0x2c5   : > { %1279 = shalt.err (!%p1276_p13)
}
 0x2c6   : > { %s1385_s20 = smov 128   ;;  %s1386_s7 = smov 8  }
 0x2c7   : > { %1045 = dma.vmem_to_hbm [thread:$0]  (%p1848_p1), %s1716_s23, 256, %s1714_s26, %s747_s13, %s1385_s20, %s1385_s20, %s1386_s7  }
 0x2c8   : > { %s385_s22 = scalar_lea.vmem [#allocation10], %s1666_s14  ;;  %s1754_s27 = scalar_lea.hbm %s1811_s4, %s1006_s30 }
 0x2c9   : > { %s761_s25 = sshll.u32 %s385_s22, 4  ;;  %s742_s14 = scalar_lea.sflag [#allocation4], %s1663_s29  ;;  %s1747_s25 = int_to_ptr.vmem [resolvable:$true] %s761_s25 }
 0x2ca   : > { %s1280_s23 = scalar_lea.vmem %s1747_s25, 256  ;;  %s1387_s26 = smov [#allocation10]  }
 0x2cb   : > { %p1281_p11 = scmp.ne.s32.totalorder %s1747_s25, %s1280_s23  ;;  %s1284_s21 = sshll.u32 %s1387_s26, 4  ;;  %s1285_s21 = int_to_ptr.vmem [resolvable:$false] %s1284_s21 }
 0x2cc   : > { %s1286_s13 = scalar_lea.vmem %s1285_s21, 512  ;;  %p1287_p7 = scmp.lt.s32.totalorder %s1747_s25, %s1285_s21 }
 0x2cd   : > { %p1282_p2 = pnand %p1281_p11, %p1848_p1  ;;  %p1288_p3 = scmp.lt.s32.totalorder %s1286_s13, %s1280_s23 }
 0x2cf   : > { %p1283_p5 = pneg %p1282_p2  ;;  %p1289_p10 = por %p1288_p3, %p1287_p7 }
 0x2d1   : > { %p1290_p9 = pnand %p1289_p10, %p1283_p5 }
 0x388   : > { %v660_v37 = vpop.f32.mrb[2].mxu0 }
 0x389   : > { %737 = vst.msk [vmem:[%s385_s22] sm:$0xff] %vm405_vm1, %v660_v37  ;;  %v1030_v38 = vpop.f32.mrb[3].mxu0 }
 0x38c   : > { %v733_v39 = vpop.f32.mrb[2].mxu1 }
 0x38d   : > { %738 = vst.msk [vmem:[%s385_s22 + $0x8] sm:$0xff] %vm405_vm1, %v733_v39  ;;  %v1035_v40 = vpop.f32.mrb[3].mxu1 }
 0x38e   : > { %1293 = shalt.err (!%p1290_p9)
}
 0x38f   : > { %s1294_s30 = scalar_lea.hbm %s1754_s27, 256  ;;  %s1298_s10 = scalar_lea.hbm %s1811_s4, 512 }
 0x390   : > { %p1295_p12 = scmp.ne.s32.totalorder %s1754_s27, %s1294_s30  ;;  %p1299_p0 = scmp.lt.u32.totalorder %s1754_s27, %s1811_s4 }
 0x391   : > { %p1300_p6 = scmp.lt.u32.totalorder %s1298_s10, %s1294_s30  ;;  %p1302_p11 = scmp.lt.u32.totalorder %s1294_s30, %s1754_s27 }
 0x392   : > { %p1296_p4 = pnand %p1295_p12, %p1848_p1 }
 0x393   : > { %p1301_p13 = por %p1300_p6, %p1299_p0 }
 0x394   : > { %p1297_p8 = pneg %p1296_p4 }
 0x395   : > { %p1303_p2 = por %p1302_p11, %p1301_p13 }
 0x397   : > { %p1304_p5 = pnand %p1303_p2, %p1297_p8 }
 0x399   : > { %1307 = shalt.err (!%p1304_p5)
}
 0x39a   : > { %1044 = dma.vmem_to_hbm [thread:$0]  (%p1848_p1), %s1747_s25, 256, %s1754_s27, %s742_s14, %s1385_s20, %s1385_s20, %s1386_s7  }
 0x39b PF: > { %s1849_s8 = sld [smem:[#allocation23_spill]]  ;;  %s1850_s12 = sld [smem:[#allocation20_spill]] }
 0x39c   : > { %s793_s16 = sand.u32 1, %s1354_s18  }
 0x39d   : > { %s794_s9 = scalar_lea.sflag [#allocation4], %s793_s16 }
 0x3a1   : > { %p1851_p7 = scmp.ne.s32.totalorder %s1849_s8, 0  ;;  %p1852_p3 = scmp.ge.s32.totalorder %s1850_s12, 2 }
 0x3a3   : > { %p1062_p10 = pnand %p1852_p3, %p1851_p7 }
 0x3a5   : > { %1345 = dma.done.wait (!%p1062_p10), %s794_s9, 256  }
 0x3a6   : > { %1347 = vsyncadd (!%p1062_p10), %s794_s9, 4294967040  ;;  %s803_s6 = scalar_lea.sflag [#allocation12], %s793_s16 }
 0x3a7   : > { %1349 = dma.done.wait (!%p1062_p10), %s803_s6, 256  }
 0x3a8   : > { %1351 = vsyncadd (!%p1062_p10), %s803_s6, 4294967040  ;;  %s31_s23 = sadd.s32 1, %s1850_s12   ;;  %s1853_s29 = sld [smem:[#allocation18_spill]] }
 0x3a9   : > { %p28_p9 = scmp.ge.s32.totalorder %s31_s23, 4   ;;  %s1854_s20 = sld [smem:[#allocation22_spill]] }
 0x3aa   : > { %s1855_s21 = sld [smem:[#allocation19_spill]]  ;;  %s1856_s22 = sld [smem:[#allocation21_spill]] }
 0x3ab   : > { %s1857_s18 = smov %s1358_s19  ;;  %30 = sbr.rel (!%p28_p9) target bundleno = 15 (0xf), region = 135 }
 0x3ae   : > { %s1858_s19 = smov %s1853_s29 }
 0x3b2   :  { %808 = vsyncpa [#allocation3], 1 }
 0x3b3   :  { %810 = vsyncpa [#allocation3 + $0x1], 1 }
 0x3b4   :  { %811 = vsyncpa [#allocation6], 1 }
 0x3b5   :  { %813 = vsyncpa [#allocation6 + $0x1], 1 }
 0x3b6   :  { %814 = vsyncpa [#allocation9], 1 }
 0x3b7   :  { %816 = vsyncpa [#allocation9 + $0x1], 1 }
 0x3b8   :  { %817 = vsyncpa [#allocation4], 1 }
 0x3b9   :  { %819 = vsyncpa [#allocation4 + $0x1], 1 }
 0x3ba   :  { %820 = vsyncpa [#allocation12], 1 }
 0x3bb   :  { %822 = vsyncpa [#allocation12 + $0x1], 1 }

</bundles_post_ra>
